<compile_context>
chip_gen: v5e
topology: v5e:2x2
jax: 0.10.0
libtpu: 0.0.40
codegen_flags: <defaults>
</compile_context>

<pallas_src>
import functools

import jax
import jax.numpy as jnp
from jax.experimental import pallas as pl
from jax.experimental.pallas import tpu as pltpu


# ---------------------------------------------------------------------------
# Kernels
# ---------------------------------------------------------------------------

def _ffn_resident_kernel(x_ref, w1_ref, b1_ref, w2_ref, b2_ref, o_ref):
    """Both weight slabs resident in VMEM; 1-D grid over row tiles."""
    # x_ref: (tm, d_model); w1_ref: (d_model, d_ff); w2_ref: (d_ff, d_model)
    h = jnp.dot(x_ref[...], w1_ref[...], preferred_element_type=jnp.float32)
    h = jnp.maximum(h + b1_ref[...], 0.0)  # ReLU
    # TODO(synk): dropout omitted (identity at inference); training would mask
    # h with pltpu.prng_seed + pltpu.prng_random_bits per row tile.
    out = jnp.dot(h.astype(w2_ref.dtype), w2_ref[...],
                  preferred_element_type=jnp.float32) + b2_ref[...]
    o_ref[...] = out.astype(o_ref.dtype)


def _ffn_ktiled_kernel_f32out(x_ref, w1_ref, b1_ref, w2_ref, b2_ref, o_ref):
    """d_ff-tiled fallback; f32 output tile used directly as the accumulator."""
    k = pl.program_id(1)

    @pl.when(k == 0)
    def _init():
        o_ref[...] = jnp.zeros_like(o_ref)

    h = jnp.dot(x_ref[...], w1_ref[...],
                preferred_element_type=jnp.float32) + b1_ref[...]
    h = jnp.maximum(h, 0.0)
    o_ref[...] += jnp.dot(h.astype(w2_ref.dtype), w2_ref[...],
                          preferred_element_type=jnp.float32)

    @pl.when(k == pl.num_programs(1) - 1)
    def _finalize():
        o_ref[...] += b2_ref[...]


def _ffn_ktiled_kernel(x_ref, w1_ref, b1_ref, w2_ref, b2_ref, o_ref, acc_ref):
    """d_ff-tiled fallback with f32 scratch accumulator (non-f32 outputs)."""
    k = pl.program_id(1)

    @pl.when(k == 0)
    def _init():
        acc_ref[...] = jnp.zeros_like(acc_ref)

    h = jnp.dot(x_ref[...], w1_ref[...],
                preferred_element_type=jnp.float32) + b1_ref[...]
    h = jnp.maximum(h, 0.0)
    acc_ref[...] += jnp.dot(h.astype(w2_ref.dtype), w2_ref[...],
                            preferred_element_type=jnp.float32)

    @pl.when(k == pl.num_programs(1) - 1)
    def _finalize():
        o_ref[...] = (acc_ref[...] + b2_ref[...]).astype(o_ref.dtype)


# ---------------------------------------------------------------------------
# Helpers (all trace-time / static Python)
# ---------------------------------------------------------------------------

def _cdiv(a, b):
    return -(-a // b)


def _round_up(x, m):
    return _cdiv(x, m) * m


def _largest_aligned_divisor(n, upper, align):
    """Largest multiple of `align` that divides n and is <= upper, else None."""
    cand = (min(upper, n) // align) * align
    while cand >= align:
        if n % cand == 0:
            return cand
        cand -= align
    return None


def _vmem_budget_bytes():
    """Per-generation VMEM budget with headroom for compiler scratch."""
    phys = 64 * 1024 * 1024  # conservative default (v7x per-TC VMEM)
    try:
        info = pltpu.get_tpu_info()
        phys = int(getattr(info, "vmem_capacity_bytes", phys))
    except Exception:
        pass
    return max(32 * 1024 * 1024, phys - 16 * 1024 * 1024)


# ---------------------------------------------------------------------------
# Wrapper
# ---------------------------------------------------------------------------

@functools.partial(jax.jit, static_argnames=("tm", "tf", "interpret"))
def positionwise_ffn(x, w1_t, b1, w2_t, b2, *, tm=None, tf=None,
                     interpret=False):
    """Transformer position-wise FFN.

    Args:
      x:    (batch, seq, d_model)
      w1_t: (d_model, d_ff)   -- PyTorch w_1.weight transposed (pre-computed)
      b1:   (d_ff,)
      w2_t: (d_ff, d_model)   -- PyTorch w_2.weight transposed (pre-computed)
      b2:   (d_model,)
      tm:   optional row-tile override
      tf:   optional d_ff-tile override (tf >= d_ff forces resident weights)
    """
    batch, seq, d_model = x.shape
    d_ff = w1_t.shape[1]
    M = batch * seq
    out_dtype = x.dtype

    x2d = x.reshape(M, d_model)
    b1_2d = b1.reshape(1, d_ff)
    b2_2d = b2.reshape(1, d_model)

    x_bytes = x.dtype.itemsize
    w_bytes = w1_t.dtype.itemsize
    o_bytes = jnp.dtype(out_dtype).itemsize

    # ---------------- tile selection (static, trace-time) ----------------
    row_align = 16 if x.dtype == jnp.bfloat16 else 8
    budget = _vmem_budget_bytes()

    if tm is None:
        tm = 1024  # the arithmetic-intensity knob: big tiles -> compute-bound
    # Keep >=2 row tiles where possible so both v7x TensorCores get work.
    half_rows = _round_up(max(_cdiv(M, 2), 1), row_align)
    tm = max(row_align, min(_round_up(tm, row_align), half_rows))

    def _resident_need(tm_):
        return (2 * tm_ * d_model * x_bytes            # x tile (double-buffered)
                + 2 * tm_ * d_model * o_bytes          # out tile
                + 4 * d_model * d_ff * w_bytes         # W1+W2 slabs (x2 bufs)
                + 2 * (d_ff + d_model) * w_bytes)      # biases

    def _ktiled_need(tm_, tf_):
        need = (2 * tm_ * d_model * x_bytes
                + 2 * tm_ * d_model * o_bytes
                + 4 * d_model * tf_ * w_bytes          # W1/W2 slices (x2 bufs)
                + 2 * (tf_ + d_model) * w_bytes)
        if out_dtype != jnp.float32:
            need += tm_ * d_model * 4                  # f32 accumulator scratch
        return need

    tf_k = None
    d_ff_pad = d_ff
    if tf is not None and tf >= d_ff:
        resident = True
    elif tf is not None:
        resident = False
        tf_k = max(128, tf)
        d_ff_pad = _round_up(d_ff, tf_k)
    else:
        resident = False
        tm_try = tm
        while True:
            if _resident_need(tm_try) <= budget:
                resident, tm = True, tm_try
                break
            if tm_try <= 256:
                break
            tm_try = max(256, _round_up(tm_try // 2, row_align))
        if not resident:
            tf_k = _largest_aligned_divisor(d_ff, 512, 128)
            if tf_k is None:
                tf_k = min(512, _round_up(d_ff, 128))
                d_ff_pad = _round_up(d_ff, tf_k)
            # Shrink tiles (row tile first) until the working set fits VMEM.
            while _ktiled_need(tm, tf_k) > budget and tm > 256:
                tm = max(256, _round_up(tm // 2, row_align))
            while _ktiled_need(tm, tf_k) > budget:
                smaller = _largest_aligned_divisor(d_ff_pad, tf_k - 128, 128)
                if smaller is None:
                    break
                tf_k = smaller

    # ---------------- padding (rows; d_ff only on the fallback path) -------
    M_pad = _round_up(M, tm)
    if M_pad != M:
        x2d = jnp.pad(x2d, ((0, M_pad - M), (0, 0)))

    if not resident and d_ff_pad != d_ff:
        # Zero-padded d_ff columns: relu(0)=0 and zero w2 rows -> no effect.
        w1_t = jnp.pad(w1_t, ((0, 0), (0, d_ff_pad - d_ff)))
        b1_2d = jnp.pad(b1_2d, ((0, 0), (0, d_ff_pad - d_ff)))
        w2_t = jnp.pad(w2_t, ((0, d_ff_pad - d_ff), (0, 0)))

    # ---------------- grid / specs / cost model ----------------------------
    if resident:
        grid = (M_pad // tm,)
        in_specs = [
            pl.BlockSpec((tm, d_model), lambda i: (i, 0)),
            pl.BlockSpec((d_model, d_ff), lambda i: (0, 0)),   # resident
            pl.BlockSpec((1, d_ff), lambda i: (0, 0)),
            pl.BlockSpec((d_ff, d_model), lambda i: (0, 0)),   # resident
            pl.BlockSpec((1, d_model), lambda i: (0, 0)),
        ]
        out_specs = pl.BlockSpec((tm, d_model), lambda i: (i, 0))
        scratch_shapes = []
        kernel = _ffn_resident_kernel
        dim_sem = ("parallel",)
        need = _resident_need(tm)
        flops = 4 * M_pad * d_model * d_ff
        bytes_accessed = (M_pad * d_model * (x_bytes + o_bytes)
                          + (2 * d_model * d_ff + d_ff + d_model) * w_bytes)
    else:
        grid = (M_pad // tm, d_ff_pad // tf_k)
        in_specs = [
            pl.BlockSpec((tm, d_model), lambda i, k: (i, 0)),
            pl.BlockSpec((d_model, tf_k), lambda i, k: (0, k)),
            pl.BlockSpec((1, tf_k), lambda i, k: (0, k)),
            pl.BlockSpec((tf_k, d_model), lambda i, k: (k, 0)),
            pl.BlockSpec((1, d_model), lambda i, k: (0, 0)),
        ]
        out_specs = pl.BlockSpec((tm, d_model), lambda i, k: (i, 0))
        if out_dtype == jnp.float32:
            kernel = _ffn_ktiled_kernel_f32out
            scratch_shapes = []
        else:
            kernel = _ffn_ktiled_kernel
            scratch_shapes = [pltpu.VMEM((tm, d_model), jnp.float32)]
        dim_sem = ("parallel", "arbitrary")
        need = _ktiled_need(tm, tf_k)
        n_row_tiles = M_pad // tm
        flops = 4 * M_pad * d_model * d_ff_pad
        # Weights are re-streamed once per row tile under this scheme.
        bytes_accessed = (M_pad * d_model * (x_bytes + o_bytes)
                          + n_row_tiles
                          * (2 * d_model * d_ff_pad + d_ff_pad + d_model)
                          * w_bytes)

    vmem_limit = int(min(budget, max(need + (4 << 20), 32 << 20)))

    out2d = pl.pallas_call(
        kernel,
        out_shape=jax.ShapeDtypeStruct((M_pad, d_model), out_dtype),
        grid_spec=pltpu.PrefetchScalarGridSpec(
            num_scalar_prefetch=0,
            grid=grid,
            in_specs=in_specs,
            out_specs=out_specs,
            scratch_shapes=scratch_shapes,
        ),
        compiler_params=pltpu.CompilerParams(
            dimension_semantics=dim_sem,
            vmem_limit_bytes=vmem_limit,
        ),
        cost_estimate=pl.CostEstimate(
            flops=int(flops), transcendentals=0,
            bytes_accessed=int(bytes_accessed)),
        interpret=interpret,
    )(x2d, w1_t, b1_2d, w2_t, b2_2d)

    return out2d[:M].reshape(batch, seq, d_model)


# ---------------------------------------------------------------------------
# Self-test
# ---------------------------------------------------------------------------

if __name__ == "__main__":
    batch, seq, d_model, d_ff = 2, 8, 32, 64

    key = jax.random.PRNGKey(0)
    kx, kw1, kb1, kw2, kb2 = jax.random.split(key, 5)

    x = jax.random.normal(kx, (batch, seq, d_model), dtype=jnp.float32)
    # PyTorch nn.Linear parameter shapes: weight (out, in), bias (out,)
    w1 = jax.random.normal(kw1, (d_ff, d_model), dtype=jnp.float32) * 0.1
    b1 = jax.random.normal(kb1, (d_ff,), dtype=jnp.float32) * 0.1
    w2 = jax.random.normal(kw2, (d_model, d_ff), dtype=jnp.float32) * 0.1
    b2 = jax.random.normal(kb2, (d_model,), dtype=jnp.float32) * 0.1

    # One-time parameter prep (outside the per-call path): pre-transpose.
    w1_t = jnp.asarray(w1.T)   # (d_model, d_ff)
    w2_t = jnp.asarray(w2.T)   # (d_ff, d_model)

    out = positionwise_ffn(x, w1_t, b1, w2_t, b2)
    out = jax.block_until_ready(out)

    # Pure-JAX reference.
    h_ref = jnp.maximum(x @ w1.T + b1, 0.0)
    ref = h_ref @ w2.T + b2
    assert out.shape == (batch, seq, d_model)
    assert jnp.allclose(out, ref, atol=1e-5, rtol=1e-5), "mismatch vs reference"

    print("KERNEL_OK")
</pallas_src>

<mosaic_0001>
module attributes {stable_mosaic.version = 11 : i64} {
  func.func @_ffn_resident_kernel(%arg0: i32, %arg1: memref<8x32xf32, #tpu.memory_space<vmem>>, %arg2: memref<32x64xf32, #tpu.memory_space<vmem>>, %arg3: memref<1x64xf32, #tpu.memory_space<vmem>>, %arg4: memref<64x32xf32, #tpu.memory_space<vmem>>, %arg5: memref<1x32xf32, #tpu.memory_space<vmem>>, %arg6: memref<8x32xf32, #tpu.memory_space<vmem>>) attributes {dimension_semantics = [#tpu.dimension_semantics<parallel>], iteration_bounds = array<i64: 2>, scalar_prefetch = 0 : i64, scratch_operands = 0 : i64, tpu.core_type = #tpu.core_type<tc>, window_params = [{transform_indices = @transform_0, window_bounds = array<i64: 8, 32>}, {pipeline_mode = #tpu.pipeline_mode<synchronous>, transform_indices = @transform_1, window_bounds = array<i64: 32, 64>}, {pipeline_mode = #tpu.pipeline_mode<synchronous>, transform_indices = @transform_2, window_bounds = array<i64: 1, 64>}, {pipeline_mode = #tpu.pipeline_mode<synchronous>, transform_indices = @transform_3, window_bounds = array<i64: 64, 32>}, {pipeline_mode = #tpu.pipeline_mode<synchronous>, transform_indices = @transform_4, window_bounds = array<i64: 1, 32>}, {transform_indices = @transform_5, window_bounds = array<i64: 8, 32>}]} {
    %c0 = arith.constant 0 : index
    %c0_0 = arith.constant 0 : index
    %0 = vector.load %arg1[%c0, %c0_0] : memref<8x32xf32, #tpu.memory_space<vmem>>, vector<8x32xf32>
    %c0_1 = arith.constant 0 : index
    %c0_2 = arith.constant 0 : index
    %1 = vector.load %arg2[%c0_1, %c0_2] : memref<32x64xf32, #tpu.memory_space<vmem>>, vector<32x64xf32>
    %cst = arith.constant dense<0.000000e+00> : vector<8x64xf32>
    %2 = tpu.matmul %0, %1, %cst {dimension_numbers = #tpu.dot_dimension_numbers<[1], [0], [0], [1], [0, 0, 1, 1], [], []>} : vector<8x32xf32>, vector<32x64xf32>, vector<8x64xf32> -> vector<8x64xf32>
    %c0_3 = arith.constant 0 : index
    %c0_4 = arith.constant 0 : index
    %3 = vector.load %arg3[%c0_3, %c0_4] : memref<1x64xf32, #tpu.memory_space<vmem>>, vector<1x64xf32>
    %4 = vector.broadcast %3 : vector<1x64xf32> to vector<8x64xf32>
    %5 = arith.addf %2, %4 : vector<8x64xf32>
    %cst_5 = arith.constant 0.000000e+00 : f32
    %6 = vector.broadcast %cst_5 : f32 to vector<8x64xf32>
    %7 = arith.maximumf %5, %6 : vector<8x64xf32>
    %c0_6 = arith.constant 0 : index
    %c0_7 = arith.constant 0 : index
    %8 = vector.load %arg4[%c0_6, %c0_7] : memref<64x32xf32, #tpu.memory_space<vmem>>, vector<64x32xf32>
    %cst_8 = arith.constant dense<0.000000e+00> : vector<8x32xf32>
    %9 = tpu.matmul %7, %8, %cst_8 {dimension_numbers = #tpu.dot_dimension_numbers<[1], [0], [0], [1], [0, 0, 1, 1], [], []>} : vector<8x64xf32>, vector<64x32xf32>, vector<8x32xf32> -> vector<8x32xf32>
    %c0_9 = arith.constant 0 : index
    %c0_10 = arith.constant 0 : index
    %10 = vector.load %arg5[%c0_9, %c0_10] : memref<1x32xf32, #tpu.memory_space<vmem>>, vector<1x32xf32>
    %11 = vector.broadcast %10 : vector<1x32xf32> to vector<8x32xf32>
    %12 = arith.addf %9, %11 : vector<8x32xf32>
    %c0_11 = arith.constant 0 : index
    %c0_12 = arith.constant 0 : index
    %13 = vector.load %arg6[%c0_11, %c0_12] : memref<8x32xf32, #tpu.memory_space<vmem>>, vector<8x32xf32>
    tpu.vector_store %arg6[%c0_11, %c0_12], %12 {strides = array<i32>} : memref<8x32xf32, #tpu.memory_space<vmem>>, vector<8x32xf32>,
    return
  }
  func.func @transform_0(%arg0: i32) -> (i32, i32) {
    %c0_i32 = arith.constant 0 : i32
    %c0_i32_0 = arith.constant 0 : i32
    return %arg0, %c0_i32 : i32, i32
  }
  func.func @transform_1(%arg0: i32) -> (i32, i32) {
    %c0_i32 = arith.constant 0 : i32
    %c0_i32_0 = arith.constant 0 : i32
    %c0_i32_1 = arith.constant 0 : i32
    return %c0_i32, %c0_i32_0 : i32, i32
  }
  func.func @transform_2(%arg0: i32) -> (i32, i32) {
    %c0_i32 = arith.constant 0 : i32
    %c0_i32_0 = arith.constant 0 : i32
    %c0_i32_1 = arith.constant 0 : i32
    return %c0_i32, %c0_i32_0 : i32, i32
  }
  func.func @transform_3(%arg0: i32) -> (i32, i32) {
    %c0_i32 = arith.constant 0 : i32
    %c0_i32_0 = arith.constant 0 : i32
    %c0_i32_1 = arith.constant 0 : i32
    return %c0_i32, %c0_i32_0 : i32, i32
  }
  func.func @transform_4(%arg0: i32) -> (i32, i32) {
    %c0_i32 = arith.constant 0 : i32
    %c0_i32_0 = arith.constant 0 : i32
    %c0_i32_1 = arith.constant 0 : i32
    return %c0_i32, %c0_i32_0 : i32, i32
  }
  func.func @transform_5(%arg0: i32) -> (i32, i32) {
    %c0_i32 = arith.constant 0 : i32
    %c0_i32_0 = arith.constant 0 : i32
    return %arg0, %c0_i32 : i32, i32
  }
}

</mosaic_0001>

<bundles_post_ra>
// kernel: positionwise_ffn.1
= control target key start
LH: loop header
LB: loop body
LE: loop exit
PB: predicated region body
PF: predicated region fallthrough
CT: control target
= control target key end

     0   :  { %10 = vsyncpa [#allocation3], 0  ;;  %s642_s0 = inlined_call_operand.vmem [shape: f32[16,32], index: 0, kind: input, shape index: {}]   ;;  %s643_s1 = inlined_call_operand.vmem [shape: f32[32,64], index: 1, kind: input, shape index: {}]   ;;  %s644_s2 = inlined_call_operand.vmem [shape: f32[1,64], index: 2, kind: input, shape index: {}]   ;;  %s645_s3 = inlined_call_operand.vmem [shape: f32[64,32], index: 3, kind: input, shape index: {}]   ;;  %s646_s4 = inlined_call_operand.vmem [shape: f32[1,32], index: 4, kind: input, shape index: {}]   ;;  %s647_s5 = inlined_call_operand.hbm [shape: f32[16,32], index: 5, kind: output, shape index: {}]  }
   0x1   :  { %12 = vsyncpa [#allocation3 + $0x1], 0  ;;  %s513_s18 = smov 0   ;;  %s515_s19 = smov 0  }
   0x2   :  { %s517_s20 = smov 0   ;;  %s519_s21 = smov 0  }
   0x3 LB: > { %s534_s22 = sadd.s32 4294967295, %s481_s21   ;;  %s366_s23 = sadd.s32 4294967294, %s481_s21   ;;  %s481_s21 = sphi %s519_s21, %s653_s21   ;;  %s477_s20 = sphi %s517_s20, %s652_s20   ;;  %s473_s19 = sphi %s515_s19, %s651_s19   ;;  %s469_s18 = sphi %s513_s18, %s650_s18  }
   0x4   : > { %s538_s24 = sadd.s32 1, %s481_s21   ;;  %s135_s25 = sadd.s32 1, %s477_s20 }
   0x5   : > { %s132_s26 = ssub.s32 %s481_s21, %s538_s24  ;;  %p145_p0 = scmp.ne.s32.totalorder %s477_s20, %s473_s19 }
   0x6   : > { %p133_p1 = scmp.eq.s32.totalorder %s132_s26, 0  ;;  %p146_p2 = scmp.eq.s32.totalorder %s534_s22, 1 }
   0x7   : > { %p151_p3 = scmp.ne.s32.totalorder %s473_s19, %s469_s18  ;;  %p152_p4 = scmp.eq.s32.totalorder %s366_s23, 1 }
   0x8   : > { %s549_s27 = scalar_select %p133_p1, %s477_s20, %s135_s25  }
   0x9   : > { %p551_p5 = por %p146_p2, %p145_p0  ;;  %p555_p6 = por %p152_p4, %p151_p3 }
   0xa   : > { %p369_p7 = scmp.ge.s32.totalorder %s481_s21, 1  ;;  %p189_p8 = scmp.lt.s32.totalorder %s481_s21, 3 }
   0xc   : > { %p190_p9 = pnand %p369_p7, %p189_p8 }
   0xd   : > { %p216_p10 = scmp.lt.s32.totalorder (!%p190_p9), %s534_s22, 1  ;;  %s375_s6 = sshll.u32 (!%p190_p9), %s534_s22, 3 }
   0xe   : > { %193 = sbr.rel (%p190_p9) target bundleno = 288 (0x120), region = 40  ;;  %s302_s9 = scalar_lea.hbm (!%p190_p9), %s647_s5, %s375_s6 }
   0xf   : > { %s306_s14 = sshll.u32 (!%p190_p9), %s302_s9, 4  ;;  %s439_s25 = scalar_lea.hbm (!%p190_p9), %s647_s5, 16  ;;  %s307_s14 = int_to_ptr.hbm [resolvable:$true] %s306_s14 }
  0x13   : > { %v224_v0 = vld [vmem:[%s643_s1 + $0x18] sm:$0xff]  ;;  %v223_v1 = vld [vmem:[%s643_s1 + $0x10] sm:$0xff]  ;;  %v222_v4 = vld [vmem:[%s643_s1 + $0x8] sm:$0xff]  ;;  %s217_s15 = scalar_select %p216_p10, %s534_s22, 1  ;;  %vm229_vm0 = vcmask 261120   ;;  %vm266_vm1 = vcmask 523264  }
  0x14   : > { %245 = vmatpush.msra.mxu0 %v224_v0  ;;  %v261_v2 = vld [vmem:[%s645_s3 + $0x38] sm:$0xff]  ;;  %v260_v3 = vld [vmem:[%s645_s3 + $0x30] sm:$0xff]  ;;  %v259_v5 = vld [vmem:[%s645_s3 + $0x28] sm:$0xff]  ;;  %s433_s22 = sshra.s32 %s307_s14, 4  ;;  %s434_s22 = int_to_ptr.hbm [resolvable:$true] %s433_s22 }
  0x15   : > { %278 = vmatpush.msra.mxu1 %v261_v2  ;;  %v221_v6 = vld [vmem:[%s643_s1] sm:$0xff]  ;;  %s371_s26 = sshll.u32 %s217_s15, 3  ;;  %v257_v9 = vld [vmem:[%s645_s3 + $0x18] sm:$0xff]  ;;  %v256_v10 = vld [vmem:[%s645_s3 + $0x10] sm:$0xff]  ;;  %s435_s16 = scalar_lea.hbm %s434_s22, 8 }
  0x16   : > { %246 = vmatpush.msra.mxu0 %v223_v1  ;;  %s219_s7 = scalar_lea.vmem %s642_s0, %s371_s26  ;;  %v258_v7 = vld [vmem:[%s645_s3 + $0x20] sm:$0xff]  ;;  %v255_v11 = vld [vmem:[%s645_s3 + $0x8] sm:$0xff]  ;;  %s213_s26 = sand.u32 1, %s473_s19  }
  0x17   : > { %279 = vmatpush.msra.mxu1 %v260_v3  ;;  %v220_v8 = vld [vmem:[%s219_s7] sm:$0xff]  ;;  %s370_s30 = sshll.u32 %s213_s26, 3  ;;  %s292_s15 = scalar_lea.sflag [#allocation3], %s213_s26 }
  0x18   : > { %247 = vmatpush.msra.mxu0 %v222_v4  ;;  %v254_v12 = vld [vmem:[%s645_s3] sm:$0xff]  ;;  %s215_s12 = scalar_lea.vmem [#allocation2], %s370_s30  ;;  %p436_p11 = scmp.ne.s32.totalorder %s434_s22, %s435_s16 }
  0x19   : > { %280 = vmatpush.msra.mxu1 %v259_v5  ;;  %v417_v13 = vld [vmem:[%s644_s2] ss:$0 sm:$0xff]  ;;  %s304_s13 = sshll.u32 %s215_s12, 4  ;;  %p440_p0 = scmp.lt.s32.totalorder %s434_s22, %s647_s5  ;;  %s305_s13 = int_to_ptr.vmem [resolvable:$true] %s304_s13 }
  0x1a   : > { %248 = vmatpush.msra.mxu0 %v221_v6  ;;  %v418_v17 = vld [vmem:[%s646_s4] ss:$0 sm:$0xff]  ;;  %p437_p12 = pnand %p436_p11, %p551_p5  ;;  %p441_p1 = scmp.lt.s32.totalorder %s439_s25, %s435_s16 }
  0x1b   : > { %372 = vmatmul.msk.f32.vlgmr.msra.gmra.mxu0 %vm229_vm0, %v220_v8  ;;  %281 = vmatpush.msra.mxu1 %v258_v7 }
  0x1c   : > { %p438_p13 = pneg %p437_p12  ;;  %p442_p2 = por %p441_p1, %p440_p0 }
  0x1d   : > { %282 = vmatpush.msra.mxu1 %v257_v9 }
  0x1e   : > { %p443_p3 = pnand %p442_p2, %p438_p13 }
  0x1f   : > { %283 = vmatpush.msra.mxu1 %v256_v10 }
  0x21   : > { %284 = vmatpush.msra.mxu1 %v255_v11 }
  0x23   : > { %285 = vmatpush.msra.mxu1 %v254_v12 }
  0x98   : > { %v250_v14 = vpop.f32.mrf.mxu0 }
  0x99   : > { %v251_v15 = vadd.f32 %v417_v13, %v250_v14 }
  0x9b   : > { %v253_v16 = vmax.f32 %v251_v15, 0.0 }
  0x9d   : > { %373 = vmatmul.msk.f32.vlgmr.msra.gmra.mxu1 %vm266_vm1, %v253_v16 }
 0x11a   : > { %v287_v18 = vpop.f32.mrf.mxu1 }
 0x11b   : > { %v288_v19 = vadd.f32 %v418_v17, %v287_v18 }
 0x11d   : > { %290 = vst.msk [vmem:[%s215_s12] sm:$0xff] %vm229_vm0, %v288_v19 }
 0x11e   : > { %446 = shalt.err (!%p443_p3)
}
 0x11f   : > { %378 = dma.vmem_to_hbm [thread:$0]  (%p551_p5), %s305_s13, 128, %s307_s14, %s292_s15  }
 0x120 PF: > { %p384_p4 = scmp.ge.s32.totalorder %s481_s21, 2  ;;  %s318_s26 = sand.u32 1, %s469_s18  }
 0x121   : > { %s319_s7 = scalar_lea.sflag [#allocation3], %s318_s26 }
 0x122   : > { %p381_p7 = pnand %p384_p4, %p555_p6 }
 0x124   : > { %p382_p8 = pneg %p381_p7 }
 0x126   : > { %464 = dma.done.wait (%p382_p8), %s319_s7, 128  }
 0x127   : > { %466 = vsyncadd (%p382_p8), %s319_s7, 4294967168  ;;  %p15_p9 = scmp.ge.s32.totalorder %s538_s24, 4   ;;  %s650_s18 = smov %s473_s19 }
 0x128   : > { %s651_s19 = smov %s477_s20  ;;  %s652_s20 = smov %s549_s27 }
 0x129   : > { %s653_s21 = smov %s538_s24  ;;  %17 = sbr.rel (!%p15_p9) target bundleno = 3 (0x3), region = 75 }
 0x12e   :  { %325 = vsyncpa [#allocation3], 1 }
 0x12f   :  { %327 = vsyncpa [#allocation3 + $0x1], 1 }

</bundles_post_ra>
